<compile_context>
chip_gen: v6e
topology: v6e:2x2x1
jax: 0.10.0
libtpu: 0.0.40
codegen_flags: <defaults>
</compile_context>

<pallas_src>
import functools

import jax
import jax.numpy as jnp
from jax.experimental import pallas as pl
from jax.experimental.pallas import tpu as pltpu

EPS = 1e-5      # nn.BatchNorm1d default eps
D_PAD = 128     # lane-dense padded feature width


# ---------------------------------------------------------------------------
# Fused Pallas kernel: one view per grid step
# ---------------------------------------------------------------------------


def simsiam_view_kernel(patches_ref,
                        conv_w_ref,
                        fc0_w_ref, bn0_g_ref, bn0_b_ref,
                        fc1_w_ref, bn1_g_ref, bn1_b_ref,
                        fc2_w_ref, fc2_b_ref,
                        pred0_w_ref, pbn_g_ref, pbn_b_ref,
                        pred1_w_ref, pred1_b_ref,
                        z_ref, p_ref, *, inv_hw, inv_n):
    """conv3x3(as matmul) -> ReLU -> global-avg-pool -> projection MLP
    (encoder.fc) -> predictor, for ONE view of the batch.

    patches_ref: (1, N, HW, K) bf16 im2col patches of this view.
    Weights are bf16, zero-padded to D_PAD lanes; padded columns stay exactly
    zero through the whole chain.  BatchNorm uses train-mode per-view batch
    statistics (biased variance), matching nn.BatchNorm1d(.train()) applied
    to each view separately.
    """
    _, n, hw, k = patches_ref.shape

    # --- stand-in backbone: conv-as-matmul over patches + ReLU + GAP ---
    x = patches_ref[...].reshape(n * hw, k)                          # bf16
    y = jnp.dot(x, conv_w_ref[...], preferred_element_type=jnp.float32)
    y = jnp.maximum(y, 0.0)
    feat = jnp.sum(y.reshape(n, hw, -1), axis=1) * inv_hw            # (n, D_PAD) f32

    def matmul(a, w_ref):
        # bf16 MXU operands (weights already bf16), f32 accumulation.
        return jnp.dot(a.astype(jnp.bfloat16), w_ref[...],
                       preferred_element_type=jnp.float32)

    def batchnorm(t, gamma_ref=None, beta_ref=None):
        mean = jnp.sum(t, axis=0, keepdims=True) * inv_n
        cent = t - mean
        var = jnp.sum(cent * cent, axis=0, keepdims=True) * inv_n
        out = cent * jax.lax.rsqrt(var + EPS)
        if gamma_ref is not None:
            out = out * gamma_ref[...] + beta_ref[...]
        return out

    # encoder.fc[0..2]: Linear(no bias) -> BN -> ReLU
    h = jnp.maximum(batchnorm(matmul(feat, fc0_w_ref), bn0_g_ref, bn0_b_ref), 0.0)
    # encoder.fc[3..5]: Linear(no bias) -> BN -> ReLU
    h = jnp.maximum(batchnorm(matmul(h, fc1_w_ref), bn1_g_ref, bn1_b_ref), 0.0)
    # encoder.fc[6..7]: Linear(+frozen bias) -> BN(affine=False)
    z = batchnorm(matmul(h, fc2_w_ref) + fc2_b_ref[...])
    # predictor[0..2]: Linear(no bias) -> BN -> ReLU
    q = jnp.maximum(batchnorm(matmul(z, pred0_w_ref), pbn_g_ref, pbn_b_ref), 0.0)
    # predictor[3]: Linear(+bias)
    p = matmul(q, pred1_w_ref) + pred1_b_ref[...]

    z_ref[0] = z.astype(z_ref.dtype)
    p_ref[0] = p.astype(p_ref.dtype)


# ---------------------------------------------------------------------------
# Pallas wrapper
# ---------------------------------------------------------------------------


def simsiam_fused(patches, params):
    """patches: (2, N, HW, K) bf16, view-major.  Returns z, p: (2, N, D_PAD) f32."""
    v, n, hw, k = patches.shape
    assert v == 2
    # Per-view train-mode BN degenerates (var=0 -> rsqrt(eps) blow-up) with a
    # single sample per view, exactly like PyTorch; guard against it.
    assert n >= 2, "per-view BatchNorm needs at least 2 samples per view"
    d = D_PAD

    def full2d(shape):
        return pl.BlockSpec(shape, lambda view: (0, 0))

    kernel = functools.partial(simsiam_view_kernel,
                               inv_hw=1.0 / hw, inv_n=1.0 / n)
    z, p = pl.pallas_call(
        kernel,
        out_shape=(jax.ShapeDtypeStruct((2, n, d), jnp.float32),
                   jax.ShapeDtypeStruct((2, n, d), jnp.float32)),
        grid=(2,),
        in_specs=[pl.BlockSpec((1, n, hw, k), lambda view: (view, 0, 0, 0)),
                  full2d((k, d)),                                   # conv_w
                  full2d((d, d)), full2d((1, d)), full2d((1, d)),   # fc0 + bn0
                  full2d((d, d)), full2d((1, d)), full2d((1, d)),   # fc1 + bn1
                  full2d((d, d)), full2d((1, d)),                   # fc2 (+ frozen bias)
                  full2d((d, d)), full2d((1, d)), full2d((1, d)),   # pred0 + pbn
                  full2d((d, d)), full2d((1, d))],                  # pred1 (+ bias)
        out_specs=(pl.BlockSpec((1, n, d), lambda view: (view, 0, 0)),
                   pl.BlockSpec((1, n, d), lambda view: (view, 0, 0))),
        compiler_params=pltpu.CompilerParams(
            dimension_semantics=("parallel",)),
    )(patches,
      params["conv_w"],
      params["fc0_w"], params["bn0_g"], params["bn0_b"],
      params["fc1_w"], params["bn1_g"], params["bn1_b"],
      params["fc2_w"], params["fc2_b"],
      params["pred0_w"], params["pbn_g"], params["pbn_b"],
      params["pred1_w"], params["pred1_b"])
    return z, p


# ---------------------------------------------------------------------------
# Model glue (plain JAX layout plumbing; all compute lives in the kernel)
# ---------------------------------------------------------------------------


def im2col_3x3(x_nchw):
    """3x3, stride 1, pad 1 im2col. Returns (B, H*W, C*9), order (C, kh, kw)."""
    b, c, h, w = x_nchw.shape
    xp = jnp.pad(x_nchw, ((0, 0), (0, 0), (1, 1), (1, 1)))
    cols = [xp[:, :, i:i + h, j:j + w] for i in range(3) for j in range(3)]
    patches = jnp.stack(cols, axis=-1)            # (B, C, H, W, 9)
    patches = patches.transpose(0, 2, 3, 1, 4)    # (B, H, W, C, 9)
    return patches.reshape(b, h * w, c * 9)


def simsiam_forward(x1, x2, params, *, dim):
    n, c, h, w = x1.shape
    x_all = jnp.concatenate([x1, x2], axis=0)                 # (2N, C, H, W)
    patches = im2col_3x3(x_all).astype(jnp.bfloat16)          # (2N, HW, C*9)
    patches = patches.reshape(2, n, h * w, c * 9)             # view-major
    z, p = simsiam_fused(patches, params)
    z1, z2 = z[0, :, :dim], z[1, :, :dim]
    p1, p2 = p[0, :, :dim], p[1, :, :dim]
    return p1, p2, jax.lax.stop_gradient(z1), jax.lax.stop_gradient(z2)


# ---------------------------------------------------------------------------
# Deterministic parameter init (logical dims, zero-padded to D_PAD lanes)
# ---------------------------------------------------------------------------


def _pad2(x, rows, cols):
    return jnp.pad(x, ((0, rows - x.shape[0]), (0, cols - x.shape[1])))


def _pad_row(x, cols):
    return jnp.pad(x, (0, cols - x.shape[0])).reshape(1, cols)


def init_params(in_ch=4, prev_dim=32, dim=64, pred_dim=16, d_pad=D_PAD):
    keys = jax.random.split(jax.random.PRNGKey(42), 8)

    def normal(key, shape, scale=0.05):
        return scale * jax.random.normal(key, shape, dtype=jnp.float32)

    k = in_ch * 9
    # conv weight (cout, cin*kh*kw) — flatten order matches im2col (C, kh, kw).
    conv_w = normal(keys[0], (prev_dim, k))
    fc0_w = normal(keys[1], (prev_dim, prev_dim))   # PyTorch (out, in)
    fc1_w = normal(keys[2], (prev_dim, prev_dim))
    fc2_w = normal(keys[3], (dim, prev_dim))
    fc2_b = normal(keys[4], (dim,), scale=0.01)     # frozen bias, still applied
    pred0_w = normal(keys[5], (pred_dim, dim))
    pred1_w = normal(keys[6], (dim, pred_dim))
    pred1_b = normal(keys[7], (dim,), scale=0.01)

    def wpad(w, rows):
        # (out, in) -> (in, out), zero-pad to lane width, pre-cast to bf16.
        return _pad2(w.T, rows, d_pad).astype(jnp.bfloat16)

    return {
        "conv_w": wpad(conv_w, k),                              # (K, D_PAD) bf16
        "fc0_w": wpad(fc0_w, d_pad),
        "bn0_g": _pad_row(jnp.ones((prev_dim,), jnp.float32), d_pad),
        "bn0_b": _pad_row(jnp.zeros((prev_dim,), jnp.float32), d_pad),
        "fc1_w": wpad(fc1_w, d_pad),
        "bn1_g": _pad_row(jnp.ones((prev_dim,), jnp.float32), d_pad),
        "bn1_b": _pad_row(jnp.zeros((prev_dim,), jnp.float32), d_pad),
        "fc2_w": wpad(fc2_w, d_pad),
        "fc2_b": _pad_row(fc2_b, d_pad),
        "pred0_w": wpad(pred0_w, d_pad),
        "pbn_g": _pad_row(jnp.ones((pred_dim,), jnp.float32), d_pad),
        "pbn_b": _pad_row(jnp.zeros((pred_dim,), jnp.float32), d_pad),
        "pred1_w": wpad(pred1_w, d_pad),
        "pred1_b": _pad_row(pred1_b, d_pad),
    }


# ---------------------------------------------------------------------------
# Main
# ---------------------------------------------------------------------------

if __name__ == "__main__":
    N, C, H, W = 2, 4, 16, 16
    prev_dim, dim, pred_dim = 32, 64, 16

    k1, k2 = jax.random.split(jax.random.PRNGKey(0))
    x1 = jax.random.normal(k1, (N, C, H, W), dtype=jnp.float32)  # NCHW
    x2 = jax.random.normal(k2, (N, C, H, W), dtype=jnp.float32)  # NCHW

    params = init_params(in_ch=C, prev_dim=prev_dim, dim=dim, pred_dim=pred_dim)

    fwd = jax.jit(lambda a, b: simsiam_forward(a, b, params, dim=dim))
    p1, p2, z1, z2 = fwd(x1, x2)
    jax.block_until_ready((p1, p2, z1, z2))

    assert p1.shape == (N, dim) and p2.shape == (N, dim)
    assert z1.shape == (N, dim) and z2.shape == (N, dim)
    assert bool(jnp.all(jnp.isfinite(p1)) and jnp.all(jnp.isfinite(p2)))
    assert bool(jnp.all(jnp.isfinite(z1)) and jnp.all(jnp.isfinite(z2)))
    print("KERNEL_OK")
</pallas_src>

<mosaic_0001>
module attributes {stable_mosaic.version = 11 : i64} {
  func.func @simsiam_view_kernel(%arg0: i32, %arg1: memref<1x2x256x36xbf16, #tpu.memory_space<vmem>>, %arg2: memref<36x128xbf16, #tpu.memory_space<vmem>>, %arg3: memref<128x128xbf16, #tpu.memory_space<vmem>>, %arg4: memref<1x128xf32, #tpu.memory_space<vmem>>, %arg5: memref<1x128xf32, #tpu.memory_space<vmem>>, %arg6: memref<128x128xbf16, #tpu.memory_space<vmem>>, %arg7: memref<1x128xf32, #tpu.memory_space<vmem>>, %arg8: memref<1x128xf32, #tpu.memory_space<vmem>>, %arg9: memref<128x128xbf16, #tpu.memory_space<vmem>>, %arg10: memref<1x128xf32, #tpu.memory_space<vmem>>, %arg11: memref<128x128xbf16, #tpu.memory_space<vmem>>, %arg12: memref<1x128xf32, #tpu.memory_space<vmem>>, %arg13: memref<1x128xf32, #tpu.memory_space<vmem>>, %arg14: memref<128x128xbf16, #tpu.memory_space<vmem>>, %arg15: memref<1x128xf32, #tpu.memory_space<vmem>>, %arg16: memref<1x2x128xf32, #tpu.memory_space<vmem>>, %arg17: memref<1x2x128xf32, #tpu.memory_space<vmem>>) attributes {dimension_semantics = [#tpu.dimension_semantics<parallel>], iteration_bounds = array<i64: 2>, scalar_prefetch = 0 : i64, scratch_operands = 0 : i64, tpu.core_type = #tpu.core_type<tc>, window_params = [{transform_indices = @transform_0, window_bounds = array<i64: 1, 2, 256, 36>}, {pipeline_mode = #tpu.pipeline_mode<synchronous>, transform_indices = @transform_1, window_bounds = array<i64: 36, 128>}, {pipeline_mode = #tpu.pipeline_mode<synchronous>, transform_indices = @transform_2, window_bounds = array<i64: 128, 128>}, {pipeline_mode = #tpu.pipeline_mode<synchronous>, transform_indices = @transform_3, window_bounds = array<i64: 1, 128>}, {pipeline_mode = #tpu.pipeline_mode<synchronous>, transform_indices = @transform_4, window_bounds = array<i64: 1, 128>}, {pipeline_mode = #tpu.pipeline_mode<synchronous>, transform_indices = @transform_5, window_bounds = array<i64: 128, 128>}, {pipeline_mode = #tpu.pipeline_mode<synchronous>, transform_indices = @transform_6, window_bounds = array<i64: 1, 128>}, {pipeline_mode = #tpu.pipeline_mode<synchronous>, transform_indices = @transform_7, window_bounds = array<i64: 1, 128>}, {pipeline_mode = #tpu.pipeline_mode<synchronous>, transform_indices = @transform_8, window_bounds = array<i64: 128, 128>}, {pipeline_mode = #tpu.pipeline_mode<synchronous>, transform_indices = @transform_9, window_bounds = array<i64: 1, 128>}, {pipeline_mode = #tpu.pipeline_mode<synchronous>, transform_indices = @transform_10, window_bounds = array<i64: 128, 128>}, {pipeline_mode = #tpu.pipeline_mode<synchronous>, transform_indices = @transform_11, window_bounds = array<i64: 1, 128>}, {pipeline_mode = #tpu.pipeline_mode<synchronous>, transform_indices = @transform_12, window_bounds = array<i64: 1, 128>}, {pipeline_mode = #tpu.pipeline_mode<synchronous>, transform_indices = @transform_13, window_bounds = array<i64: 128, 128>}, {pipeline_mode = #tpu.pipeline_mode<synchronous>, transform_indices = @transform_14, window_bounds = array<i64: 1, 128>}, {transform_indices = @transform_15, window_bounds = array<i64: 1, 2, 128>}, {transform_indices = @transform_16, window_bounds = array<i64: 1, 2, 128>}]} {
    %c0 = arith.constant 0 : index
    %c0_0 = arith.constant 0 : index
    %c0_1 = arith.constant 0 : index
    %c0_2 = arith.constant 0 : index
    %0 = vector.load %arg1[%c0, %c0_0, %c0_1, %c0_2] : memref<1x2x256x36xbf16, #tpu.memory_space<vmem>>, vector<1x2x256x36xbf16>
    %1 = vector.shape_cast %0 : vector<1x2x256x36xbf16> to vector<512x36xbf16>
    %c0_3 = arith.constant 0 : index
    %c0_4 = arith.constant 0 : index
    %2 = vector.load %arg2[%c0_3, %c0_4] : memref<36x128xbf16, #tpu.memory_space<vmem>>, vector<36x128xbf16>
    %cst = arith.constant dense<0.000000e+00> : vector<512x128xf32>
    %3 = tpu.matmul %1, %2, %cst {dimension_numbers = #tpu.dot_dimension_numbers<[1], [0], [0], [1], [0, 0, 1, 1], [], []>} : vector<512x36xbf16>, vector<36x128xbf16>, vector<512x128xf32> -> vector<512x128xf32>
    %cst_5 = arith.constant 0.000000e+00 : f32
    %4 = vector.broadcast %cst_5 : f32 to vector<512x128xf32>
    %5 = arith.maximumf %3, %4 : vector<512x128xf32>
    %6 = vector.shape_cast %5 : vector<512x128xf32> to vector<2x256x128xf32>
    %cst_6 = arith.constant dense<0.000000e+00> : vector<2x128xf32>
    %7 = vector.multi_reduction <add>, %6, %cst_6 [1] : vector<2x256x128xf32> to vector<2x128xf32>
    %cst_7 = arith.constant 3.906250e-03 : f32
    %8 = vector.broadcast %cst_7 : f32 to vector<2x128xf32>
    %9 = arith.mulf %7, %8 : vector<2x128xf32>
    %10 = arith.truncf %9 : vector<2x128xf32> to vector<2x128xbf16>
    %c0_8 = arith.constant 0 : index
    %c0_9 = arith.constant 0 : index
    %11 = vector.load %arg3[%c0_8, %c0_9] : memref<128x128xbf16, #tpu.memory_space<vmem>>, vector<128x128xbf16>
    %cst_10 = arith.constant dense<0.000000e+00> : vector<2x128xf32>
    %12 = tpu.matmul %10, %11, %cst_10 {dimension_numbers = #tpu.dot_dimension_numbers<[1], [0], [0], [1], [0, 0, 1, 1], [], []>} : vector<2x128xbf16>, vector<128x128xbf16>, vector<2x128xf32> -> vector<2x128xf32>
    %cst_11 = arith.constant dense<0.000000e+00> : vector<128xf32>
    %13 = vector.multi_reduction <add>, %12, %cst_11 [0] : vector<2x128xf32> to vector<128xf32>
    %14 = vector.shape_cast %13 : vector<128xf32> to vector<1x128xf32>
    %cst_12 = arith.constant 5.000000e-01 : f32
    %15 = vector.broadcast %cst_12 : f32 to vector<1x128xf32>
    %16 = arith.mulf %14, %15 : vector<1x128xf32>
    %17 = vector.broadcast %16 : vector<1x128xf32> to vector<2x128xf32>
    %18 = arith.subf %12, %17 : vector<2x128xf32>
    %19 = arith.mulf %18, %18 : vector<2x128xf32>
    %cst_13 = arith.constant dense<0.000000e+00> : vector<128xf32>
    %20 = vector.multi_reduction <add>, %19, %cst_13 [0] : vector<2x128xf32> to vector<128xf32>
    %21 = vector.shape_cast %20 : vector<128xf32> to vector<1x128xf32>
    %cst_14 = arith.constant 5.000000e-01 : f32
    %22 = vector.broadcast %cst_14 : f32 to vector<1x128xf32>
    %23 = arith.mulf %21, %22 : vector<1x128xf32>
    %cst_15 = arith.constant 9.99999974E-6 : f32
    %24 = vector.broadcast %cst_15 : f32 to vector<1x128xf32>
    %25 = arith.addf %23, %24 : vector<1x128xf32>
    %26 = math.rsqrt %25 : vector<1x128xf32>
    %27 = vector.broadcast %26 : vector<1x128xf32> to vector<2x128xf32>
    %28 = arith.mulf %18, %27 : vector<2x128xf32>
    %c0_16 = arith.constant 0 : index
    %c0_17 = arith.constant 0 : index
    %29 = vector.load %arg4[%c0_16, %c0_17] : memref<1x128xf32, #tpu.memory_space<vmem>>, vector<1x128xf32>
    %30 = vector.broadcast %29 : vector<1x128xf32> to vector<2x128xf32>
    %31 = arith.mulf %28, %30 : vector<2x128xf32>
    %c0_18 = arith.constant 0 : index
    %c0_19 = arith.constant 0 : index
    %32 = vector.load %arg5[%c0_18, %c0_19] : memref<1x128xf32, #tpu.memory_space<vmem>>, vector<1x128xf32>
    %33 = vector.broadcast %32 : vector<1x128xf32> to vector<2x128xf32>
    %34 = arith.addf %31, %33 : vector<2x128xf32>
    %cst_20 = arith.constant 0.000000e+00 : f32
    %35 = vector.broadcast %cst_20 : f32 to vector<2x128xf32>
    %36 = arith.maximumf %34, %35 : vector<2x128xf32>
    %37 = arith.truncf %36 : vector<2x128xf32> to vector<2x128xbf16>
    %c0_21 = arith.constant 0 : index
    %c0_22 = arith.constant 0 : index
    %38 = vector.load %arg6[%c0_21, %c0_22] : memref<128x128xbf16, #tpu.memory_space<vmem>>, vector<128x128xbf16>
    %cst_23 = arith.constant dense<0.000000e+00> : vector<2x128xf32>
    %39 = tpu.matmul %37, %38, %cst_23 {dimension_numbers = #tpu.dot_dimension_numbers<[1], [0], [0], [1], [0, 0, 1, 1], [], []>} : vector<2x128xbf16>, vector<128x128xbf16>, vector<2x128xf32> -> vector<2x128xf32>
    %cst_24 = arith.constant dense<0.000000e+00> : vector<128xf32>
    %40 = vector.multi_reduction <add>, %39, %cst_24 [0] : vector<2x128xf32> to vector<128xf32>
    %41 = vector.shape_cast %40 : vector<128xf32> to vector<1x128xf32>
    %cst_25 = arith.constant 5.000000e-01 : f32
    %42 = vector.broadcast %cst_25 : f32 to vector<1x128xf32>
    %43 = arith.mulf %41, %42 : vector<1x128xf32>
    %44 = vector.broadcast %43 : vector<1x128xf32> to vector<2x128xf32>
    %45 = arith.subf %39, %44 : vector<2x128xf32>
    %46 = arith.mulf %45, %45 : vector<2x128xf32>
    %cst_26 = arith.constant dense<0.000000e+00> : vector<128xf32>
    %47 = vector.multi_reduction <add>, %46, %cst_26 [0] : vector<2x128xf32> to vector<128xf32>
    %48 = vector.shape_cast %47 : vector<128xf32> to vector<1x128xf32>
    %cst_27 = arith.constant 5.000000e-01 : f32
    %49 = vector.broadcast %cst_27 : f32 to vector<1x128xf32>
    %50 = arith.mulf %48, %49 : vector<1x128xf32>
    %cst_28 = arith.constant 9.99999974E-6 : f32
    %51 = vector.broadcast %cst_28 : f32 to vector<1x128xf32>
    %52 = arith.addf %50, %51 : vector<1x128xf32>
    %53 = math.rsqrt %52 : vector<1x128xf32>
    %54 = vector.broadcast %53 : vector<1x128xf32> to vector<2x128xf32>
    %55 = arith.mulf %45, %54 : vector<2x128xf32>
    %c0_29 = arith.constant 0 : index
    %c0_30 = arith.constant 0 : index
    %56 = vector.load %arg7[%c0_29, %c0_30] : memref<1x128xf32, #tpu.memory_space<vmem>>, vector<1x128xf32>
    %57 = vector.broadcast %56 : vector<1x128xf32> to vector<2x128xf32>
    %58 = arith.mulf %55, %57 : vector<2x128xf32>
    %c0_31 = arith.constant 0 : index
    %c0_32 = arith.constant 0 : index
    %59 = vector.load %arg8[%c0_31, %c0_32] : memref<1x128xf32, #tpu.memory_space<vmem>>, vector<1x128xf32>
    %60 = vector.broadcast %59 : vector<1x128xf32> to vector<2x128xf32>
    %61 = arith.addf %58, %60 : vector<2x128xf32>
    %cst_33 = arith.constant 0.000000e+00 : f32
    %62 = vector.broadcast %cst_33 : f32 to vector<2x128xf32>
    %63 = arith.maximumf %61, %62 : vector<2x128xf32>
    %64 = arith.truncf %63 : vector<2x128xf32> to vector<2x128xbf16>
    %c0_34 = arith.constant 0 : index
    %c0_35 = arith.constant 0 : index
    %65 = vector.load %arg9[%c0_34, %c0_35] : memref<128x128xbf16, #tpu.memory_space<vmem>>, vector<128x128xbf16>
    %cst_36 = arith.constant dense<0.000000e+00> : vector<2x128xf32>
    %66 = tpu.matmul %64, %65, %cst_36 {dimension_numbers = #tpu.dot_dimension_numbers<[1], [0], [0], [1], [0, 0, 1, 1], [], []>} : vector<2x128xbf16>, vector<128x128xbf16>, vector<2x128xf32> -> vector<2x128xf32>
    %c0_37 = arith.constant 0 : index
    %c0_38 = arith.constant 0 : index
    %67 = vector.load %arg10[%c0_37, %c0_38] : memref<1x128xf32, #tpu.memory_space<vmem>>, vector<1x128xf32>
    %68 = vector.broadcast %67 : vector<1x128xf32> to vector<2x128xf32>
    %69 = arith.addf %66, %68 : vector<2x128xf32>
    %cst_39 = arith.constant dense<0.000000e+00> : vector<128xf32>
    %70 = vector.multi_reduction <add>, %69, %cst_39 [0] : vector<2x128xf32> to vector<128xf32>
    %71 = vector.shape_cast %70 : vector<128xf32> to vector<1x128xf32>
    %cst_40 = arith.constant 5.000000e-01 : f32
    %72 = vector.broadcast %cst_40 : f32 to vector<1x128xf32>
    %73 = arith.mulf %71, %72 : vector<1x128xf32>
    %74 = vector.broadcast %73 : vector<1x128xf32> to vector<2x128xf32>
    %75 = arith.subf %69, %74 : vector<2x128xf32>
    %76 = arith.mulf %75, %75 : vector<2x128xf32>
    %cst_41 = arith.constant dense<0.000000e+00> : vector<128xf32>
    %77 = vector.multi_reduction <add>, %76, %cst_41 [0] : vector<2x128xf32> to vector<128xf32>
    %78 = vector.shape_cast %77 : vector<128xf32> to vector<1x128xf32>
    %cst_42 = arith.constant 5.000000e-01 : f32
    %79 = vector.broadcast %cst_42 : f32 to vector<1x128xf32>
    %80 = arith.mulf %78, %79 : vector<1x128xf32>
    %cst_43 = arith.constant 9.99999974E-6 : f32
    %81 = vector.broadcast %cst_43 : f32 to vector<1x128xf32>
    %82 = arith.addf %80, %81 : vector<1x128xf32>
    %83 = math.rsqrt %82 : vector<1x128xf32>
    %84 = vector.broadcast %83 : vector<1x128xf32> to vector<2x128xf32>
    %85 = arith.mulf %75, %84 : vector<2x128xf32>
    %86 = arith.truncf %85 : vector<2x128xf32> to vector<2x128xbf16>
    %c0_44 = arith.constant 0 : index
    %c0_45 = arith.constant 0 : index
    %87 = vector.load %arg11[%c0_44, %c0_45] : memref<128x128xbf16, #tpu.memory_space<vmem>>, vector<128x128xbf16>
    %cst_46 = arith.constant dense<0.000000e+00> : vector<2x128xf32>
    %88 = tpu.matmul %86, %87, %cst_46 {dimension_numbers = #tpu.dot_dimension_numbers<[1], [0], [0], [1], [0, 0, 1, 1], [], []>} : vector<2x128xbf16>, vector<128x128xbf16>, vector<2x128xf32> -> vector<2x128xf32>
    %cst_47 = arith.constant dense<0.000000e+00> : vector<128xf32>
    %89 = vector.multi_reduction <add>, %88, %cst_47 [0] : vector<2x128xf32> to vector<128xf32>
    %90 = vector.shape_cast %89 : vector<128xf32> to vector<1x128xf32>
    %cst_48 = arith.constant 5.000000e-01 : f32
    %91 = vector.broadcast %cst_48 : f32 to vector<1x128xf32>
    %92 = arith.mulf %90, %91 : vector<1x128xf32>
    %93 = vector.broadcast %92 : vector<1x128xf32> to vector<2x128xf32>
    %94 = arith.subf %88, %93 : vector<2x128xf32>
    %95 = arith.mulf %94, %94 : vector<2x128xf32>
    %cst_49 = arith.constant dense<0.000000e+00> : vector<128xf32>
    %96 = vector.multi_reduction <add>, %95, %cst_49 [0] : vector<2x128xf32> to vector<128xf32>
    %97 = vector.shape_cast %96 : vector<128xf32> to vector<1x128xf32>
    %cst_50 = arith.constant 5.000000e-01 : f32
    %98 = vector.broadcast %cst_50 : f32 to vector<1x128xf32>
    %99 = arith.mulf %97, %98 : vector<1x128xf32>
    %cst_51 = arith.constant 9.99999974E-6 : f32
    %100 = vector.broadcast %cst_51 : f32 to vector<1x128xf32>
    %101 = arith.addf %99, %100 : vector<1x128xf32>
    %102 = math.rsqrt %101 : vector<1x128xf32>
    %103 = vector.broadcast %102 : vector<1x128xf32> to vector<2x128xf32>
    %104 = arith.mulf %94, %103 : vector<2x128xf32>
    %c0_52 = arith.constant 0 : index
    %c0_53 = arith.constant 0 : index
    %105 = vector.load %arg12[%c0_52, %c0_53] : memref<1x128xf32, #tpu.memory_space<vmem>>, vector<1x128xf32>
    %106 = vector.broadcast %105 : vector<1x128xf32> to vector<2x128xf32>
    %107 = arith.mulf %104, %106 : vector<2x128xf32>
    %c0_54 = arith.constant 0 : index
    %c0_55 = arith.constant 0 : index
    %108 = vector.load %arg13[%c0_54, %c0_55] : memref<1x128xf32, #tpu.memory_space<vmem>>, vector<1x128xf32>
    %109 = vector.broadcast %108 : vector<1x128xf32> to vector<2x128xf32>
    %110 = arith.addf %107, %109 : vector<2x128xf32>
    %cst_56 = arith.constant 0.000000e+00 : f32
    %111 = vector.broadcast %cst_56 : f32 to vector<2x128xf32>
    %112 = arith.maximumf %110, %111 : vector<2x128xf32>
    %113 = arith.truncf %112 : vector<2x128xf32> to vector<2x128xbf16>
    %c0_57 = arith.constant 0 : index
    %c0_58 = arith.constant 0 : index
    %114 = vector.load %arg14[%c0_57, %c0_58] : memref<128x128xbf16, #tpu.memory_space<vmem>>, vector<128x128xbf16>
    %cst_59 = arith.constant dense<0.000000e+00> : vector<2x128xf32>
    %115 = tpu.matmul %113, %114, %cst_59 {dimension_numbers = #tpu.dot_dimension_numbers<[1], [0], [0], [1], [0, 0, 1, 1], [], []>} : vector<2x128xbf16>, vector<128x128xbf16>, vector<2x128xf32> -> vector<2x128xf32>
    %c0_60 = arith.constant 0 : index
    %c0_61 = arith.constant 0 : index
    %116 = vector.load %arg15[%c0_60, %c0_61] : memref<1x128xf32, #tpu.memory_space<vmem>>, vector<1x128xf32>
    %117 = vector.broadcast %116 : vector<1x128xf32> to vector<2x128xf32>
    %118 = arith.addf %115, %117 : vector<2x128xf32>
    %c0_62 = arith.constant 0 : index
    %c0_63 = arith.constant 0 : index
    %c0_64 = arith.constant 0 : index
    %119 = vector.load %arg16[%c0_62, %c0_63, %c0_64] : memref<1x2x128xf32, #tpu.memory_space<vmem>>, vector<1x2x128xf32>
    %120 = vector.shape_cast %119 : vector<1x2x128xf32> to vector<2x128xf32>
    %121 = vector.shape_cast %85 : vector<2x128xf32> to vector<1x2x128xf32>
    tpu.vector_store %arg16[%c0_62, %c0_63, %c0_64], %121 {strides = array<i32>} : memref<1x2x128xf32, #tpu.memory_space<vmem>>, vector<1x2x128xf32>,
    %c0_65 = arith.constant 0 : index
    %c0_66 = arith.constant 0 : index
    %c0_67 = arith.constant 0 : index
    %122 = vector.load %arg17[%c0_65, %c0_66, %c0_67] : memref<1x2x128xf32, #tpu.memory_space<vmem>>, vector<1x2x128xf32>
    %123 = vector.shape_cast %122 : vector<1x2x128xf32> to vector<2x128xf32>
    %124 = vector.shape_cast %118 : vector<2x128xf32> to vector<1x2x128xf32>
    tpu.vector_store %arg17[%c0_65, %c0_66, %c0_67], %124 {strides = array<i32>} : memref<1x2x128xf32, #tpu.memory_space<vmem>>, vector<1x2x128xf32>,
    return
  }
  func.func @transform_0(%arg0: i32) -> (i32, i32, i32, i32) {
    %c0_i32 = arith.constant 0 : i32
    %c0_i32_0 = arith.constant 0 : i32
    %c0_i32_1 = arith.constant 0 : i32
    %c0_i32_2 = arith.constant 0 : i32
    return %arg0, %c0_i32, %c0_i32_0, %c0_i32_1 : i32, i32, i32, i32
  }
  func.func @transform_1(%arg0: i32) -> (i32, i32) {
    %c0_i32 = arith.constant 0 : i32
    %c0_i32_0 = arith.constant 0 : i32
    %c0_i32_1 = arith.constant 0 : i32
    return %c0_i32, %c0_i32_0 : i32, i32
  }
  func.func @transform_2(%arg0: i32) -> (i32, i32) {
    %c0_i32 = arith.constant 0 : i32
    %c0_i32_0 = arith.constant 0 : i32
    %c0_i32_1 = arith.constant 0 : i32
    return %c0_i32, %c0_i32_0 : i32, i32
  }
  func.func @transform_3(%arg0: i32) -> (i32, i32) {
    %c0_i32 = arith.constant 0 : i32
    %c0_i32_0 = arith.constant 0 : i32
    %c0_i32_1 = arith.constant 0 : i32
    return %c0_i32, %c0_i32_0 : i32, i32
  }
  func.func @transform_4(%arg0: i32) -> (i32, i32) {
    %c0_i32 = arith.constant 0 : i32
    %c0_i32_0 = arith.constant 0 : i32
    %c0_i32_1 = arith.constant 0 : i32
    return %c0_i32, %c0_i32_0 : i32, i32
  }
  func.func @transform_5(%arg0: i32) -> (i32, i32) {
    %c0_i32 = arith.constant 0 : i32
    %c0_i32_0 = arith.constant 0 : i32
    %c0_i32_1 = arith.constant 0 : i32
    return %c0_i32, %c0_i32_0 : i32, i32
  }
  func.func @transform_6(%arg0: i32) -> (i32, i32) {
    %c0_i32 = arith.constant 0 : i32
    %c0_i32_0 = arith.constant 0 : i32
    %c0_i32_1 = arith.constant 0 : i32
    return %c0_i32, %c0_i32_0 : i32, i32
  }
  func.func @transform_7(%arg0: i32) -> (i32, i32) {
    %c0_i32 = arith.constant 0 : i32
    %c0_i32_0 = arith.constant 0 : i32
    %c0_i32_1 = arith.constant 0 : i32
    return %c0_i32, %c0_i32_0 : i32, i32
  }
  func.func @transform_8(%arg0: i32) -> (i32, i32) {
    %c0_i32 = arith.constant 0 : i32
    %c0_i32_0 = arith.constant 0 : i32
    %c0_i32_1 = arith.constant 0 : i32
    return %c0_i32, %c0_i32_0 : i32, i32
  }
  func.func @transform_9(%arg0: i32) -> (i32, i32) {
    %c0_i32 = arith.constant 0 : i32
    %c0_i32_0 = arith.constant 0 : i32
    %c0_i32_1 = arith.constant 0 : i32
    return %c0_i32, %c0_i32_0 : i32, i32
  }
  func.func @transform_10(%arg0: i32) -> (i32, i32) {
    %c0_i32 = arith.constant 0 : i32
    %c0_i32_0 = arith.constant 0 : i32
    %c0_i32_1 = arith.constant 0 : i32
    return %c0_i32, %c0_i32_0 : i32, i32
  }
  func.func @transform_11(%arg0: i32) -> (i32, i32) {
    %c0_i32 = arith.constant 0 : i32
    %c0_i32_0 = arith.constant 0 : i32
    %c0_i32_1 = arith.constant 0 : i32
    return %c0_i32, %c0_i32_0 : i32, i32
  }
  func.func @transform_12(%arg0: i32) -> (i32, i32) {
    %c0_i32 = arith.constant 0 : i32
    %c0_i32_0 = arith.constant 0 : i32
    %c0_i32_1 = arith.constant 0 : i32
    return %c0_i32, %c0_i32_0 : i32, i32
  }
  func.func @transform_13(%arg0: i32) -> (i32, i32) {
    %c0_i32 = arith.constant 0 : i32
    %c0_i32_0 = arith.constant 0 : i32
    %c0_i32_1 = arith.constant 0 : i32
    return %c0_i32, %c0_i32_0 : i32, i32
  }
  func.func @transform_14(%arg0: i32) -> (i32, i32) {
    %c0_i32 = arith.constant 0 : i32
    %c0_i32_0 = arith.constant 0 : i32
    %c0_i32_1 = arith.constant 0 : i32
    return %c0_i32, %c0_i32_0 : i32, i32
  }
  func.func @transform_15(%arg0: i32) -> (i32, i32, i32) {
    %c0_i32 = arith.constant 0 : i32
    %c0_i32_0 = arith.constant 0 : i32
    %c0_i32_1 = arith.constant 0 : i32
    return %arg0, %c0_i32, %c0_i32_0 : i32, i32, i32
  }
  func.func @transform_16(%arg0: i32) -> (i32, i32, i32) {
    %c0_i32 = arith.constant 0 : i32
    %c0_i32_0 = arith.constant 0 : i32
    %c0_i32_1 = arith.constant 0 : i32
    return %arg0, %c0_i32, %c0_i32_0 : i32, i32, i32
  }
}

</mosaic_0001>

<bundles_post_ra>
// kernel: _lambda_.1
= control target key start
LH: loop header
LB: loop body
LE: loop exit
PB: predicated region body
PF: predicated region fallthrough
CT: control target
= control target key end

     0   :  { %s2641_s21 = smov 0   ;;  %s2952_s0 = inlined_call_operand.vmem [shape: bf16[2,2,256,36], index: 0, kind: input, shape index: {}]   ;;  %s2953_s1 = inlined_call_operand.vmem [shape: bf16[36,128], index: 1, kind: input, shape index: {}]   ;;  %s2954_s2 = inlined_call_operand.vmem [shape: bf16[128,128], index: 2, kind: input, shape index: {}]   ;;  %s2955_s3 = inlined_call_operand.vmem [shape: f32[1,128], index: 3, kind: input, shape index: {}, may-alias: {3,6}]   ;;  %s2956_s4 = inlined_call_operand.vmem [shape: f32[1,128], index: 4, kind: input, shape index: {}, may-alias: {4,7,12}]   ;;  %s2957_s5 = inlined_call_operand.vmem [shape: bf16[128,128], index: 5, kind: input, shape index: {}]   ;;  %s2958_s6 = inlined_call_operand.vmem [shape: f32[1,128], index: 6, kind: input, shape index: {}, may-alias: {3,6}]   ;;  %s2959_s7 = inlined_call_operand.vmem [shape: f32[1,128], index: 7, kind: input, shape index: {}, may-alias: {4,7,12}]   ;;  %s2960_s8 = inlined_call_operand.vmem [shape: bf16[128,128], index: 8, kind: input, shape index: {}]   ;;  %s2961_s9 = inlined_call_operand.vmem [shape: f32[1,128], index: 9, kind: input, shape index: {}]   ;;  %s2962_s10 = inlined_call_operand.vmem [shape: bf16[128,128], index: 10, kind: input, shape index: {}]   ;;  %s2963_s11 = inlined_call_operand.vmem [shape: f32[1,128], index: 11, kind: input, shape index: {}]   ;;  %s2964_s12 = inlined_call_operand.vmem [shape: f32[1,128], index: 12, kind: input, shape index: {}, may-alias: {4,7,12}]   ;;  %s2965_s13 = inlined_call_operand.vmem [shape: bf16[128,128], index: 13, kind: input, shape index: {}]   ;;  %s2966_s14 = inlined_call_operand.vmem [shape: f32[1,128], index: 14, kind: input, shape index: {}]   ;;  %s2967_s15 = inlined_call_operand.vmem [shape: f32[2,2,128], index: 15, kind: output, shape index: {0}]   ;;  %s2968_s16 = inlined_call_operand.vmem [shape: f32[2,2,128], index: 16, kind: output, shape index: {1}]  }
   0x1   :  { %2969 = sst [smem:[#allocation2_spill]] %s2952_s0 }
   0x2 LB: > { %s2075_s22 = sadd.s32 4294967295, %s2552_s21   ;;  %p2079_p0 = scmp.ge.s32.totalorder %s2552_s21, 1  ;;  %s2552_s21 = sphi %s2641_s21, %s27_s21  }
   0x3   : > { %p465_p1 = scmp.lt.s32.totalorder %s2552_s21, 3 }
   0x5   : > { %p466_p2 = pnand %p2079_p0, %p465_p1 }
   0x6   : > { %p518_p3 = scmp.lt.s32.totalorder (!%p466_p2), %s2075_s22, 1  ;;  %s2970_s17 = sld [smem:[#allocation2_spill]] (!%p466_p2) }
   0x7   : > { %469 = sbr.rel (%p466_p2) target bundleno = 1580 (0x62c), region = 80 }
   0xc   : > { %v2463_v0 = vld [vmem:[%s2953_s1 + $0x10] ss:$0 sps:$4 sm:$0x33]   ;;  %vm873_vm0 = vcmask 1041408   ;;  %v2464_v1 = vld [vmem:[%s2953_s1 + $0x8] sm:$0xff]   ;;  %v2465_v3 = vld [vmem:[%s2953_s1] sm:$0xff]  }
   0xd   : > { %2452 = vmatprep.subr.msk.bf16.mxu0 %vm873_vm0, %v2463_v0  ;;  %v875_v2 = vsel %vm873_vm0, %v2463_v0, 0  ;;  %s2972_s22 = smov (!%p518_p3, %s2075_s22), 1  ;;  %vm776_vm1 = vcmask 293888   ;;  %v2498_v36 = vld [vmem:[%s2954_s2 + $0x38] sm:$0xff]   ;;  %v2554_v37 = vmov 0.0   ;;  %v2499_v38 = vld [vmem:[%s2954_s2 + $0x30] sm:$0xff]  }
   0xe   : > { %2283 = vmatpush3.bf16.msra.mxu0 %v875_v2  ;;  %s2201_s29 = sshll.u32 %s2972_s22, 8  ;;  %2352 = vmatprep.subr.bf16.mxu1 %v2554_v37  ;;  %v2500_v41 = vld [vmem:[%s2954_s2 + $0x28] sm:$0xff]   ;;  %v2501_v46 = vld [vmem:[%s2954_s2 + $0x20] sm:$0xff]   ;;  %v2502_v53 = vld [vmem:[%s2954_s2 + $0x18] sm:$0xff]   ;;  %vm2555_vm2 = vmmov 0   ;;  %vm1328_vm3 = vcmask 1041409  }
   0xf   : > { %2284 = vmatprep.subr.bf16.mxu0 %v2464_v1  ;;  %s2666_s18 = scalar_lea.vmem %s2970_s17, %s2201_s29  ;;  %2353 = vmatpush3.bf16.msra.mxu1 %v2498_v36  ;;  %v2503_v57 = vld [vmem:[%s2954_s2 + $0x10] sm:$0xff]   ;;  %v2504_v0 = vld [vmem:[%s2954_s2 + $0x8] sm:$0xff]   ;;  %s2082_s27 = sshll.u32 %s2972_s22, 1 }
  0x10   : > { %v2466_v4 = vld [vmem:[%s2666_s18] sm:$0xff]   ;;  %v2467_v5 = vld [vmem:[%s2666_s18 + $0x8] sm:$0xff]   ;;  %v2468_v6 = vld [vmem:[%s2666_s18 + $0x10] sm:$0xff]   ;;  %2354 = vmatprep.subr.bf16.mxu1 %v2554_v37  ;;  %2368 = vmatprep.mubr.msk.bf16.mxu1 %vm2555_vm2, %v2554_v37  ;;  %s526_s30 = scalar_lea.vmem %s2967_s15, %s2082_s27 }
  0x11   : > { %2288 = vmatprep.mubr.msk.bf16.mxu0 %vm776_vm1, %v2466_v4  ;;  %v2469_v7 = vld [vmem:[%s2666_s18 + $0x18] sm:$0xff]   ;;  %v2470_v8 = vld [vmem:[%s2666_s18 + $0x20] sm:$0xff]   ;;  %v2471_v9 = vld [vmem:[%s2666_s18 + $0x28] sm:$0xff]  }
  0x12   : > { %2285 = vmatpush3.bf16.msra.mxu0 %v2464_v1  ;;  %v2472_v10 = vld [vmem:[%s2666_s18 + $0x30] sm:$0xff]   ;;  %v2473_v11 = vld [vmem:[%s2666_s18 + $0x38] sm:$0xff]   ;;  %v2474_v12 = vld [vmem:[%s2666_s18 + $0x40] sm:$0xff]  }
  0x13   : > { %2286 = vmatprep.subr.bf16.mxu0 %v2465_v3  ;;  %v2475_v13 = vld [vmem:[%s2666_s18 + $0x48] sm:$0xff]   ;;  %v2476_v14 = vld [vmem:[%s2666_s18 + $0x50] sm:$0xff]   ;;  %v2477_v15 = vld [vmem:[%s2666_s18 + $0x58] sm:$0xff]   ;;  %2355 = vmatpush3.bf16.msra.mxu1 %v2499_v38 }
  0x14   : > { %v2478_v16 = vld [vmem:[%s2666_s18 + $0x60] sm:$0xff]   ;;  %v2479_v17 = vld [vmem:[%s2666_s18 + $0x68] sm:$0xff]   ;;  %v2480_v18 = vld [vmem:[%s2666_s18 + $0x70] sm:$0xff]   ;;  %2356 = vmatprep.subr.bf16.mxu1 %v2554_v37 }
  0x15   : > { %v2481_v19 = vld [vmem:[%s2666_s18 + $0x78] sm:$0xff]   ;;  %v2482_v20 = vld [vmem:[%s2666_s18 + $0x80] sm:$0xff]   ;;  %v2483_v21 = vld [vmem:[%s2666_s18 + $0x88] sm:$0xff]  }
  0x16   : > { %2287 = vmatpush3.bf16.msra.mxu0 %v2465_v3  ;;  %v2484_v22 = vld [vmem:[%s2666_s18 + $0x90] sm:$0xff]   ;;  %v2485_v23 = vld [vmem:[%s2666_s18 + $0x98] sm:$0xff]   ;;  %v2486_v24 = vld [vmem:[%s2666_s18 + $0xa0] sm:$0xff]  }
  0x17   : > { %v2487_v25 = vld [vmem:[%s2666_s18 + $0xa8] sm:$0xff]   ;;  %v2488_v26 = vld [vmem:[%s2666_s18 + $0xb0] sm:$0xff]   ;;  %v2489_v27 = vld [vmem:[%s2666_s18 + $0xb8] sm:$0xff]   ;;  %2432 = vmatprep.subr.bf16.mxu0 %v2554_v37  ;;  %2357 = vmatpush3.bf16.msra.mxu1 %v2500_v41 }
  0x18   : > { %v2490_v28 = vld [vmem:[%s2666_s18 + $0xc0] sm:$0xff]   ;;  %v2491_v29 = vld [vmem:[%s2666_s18 + $0xc8] sm:$0xff]   ;;  %v2492_v30 = vld [vmem:[%s2666_s18 + $0xd0] sm:$0xff]   ;;  %2358 = vmatprep.subr.bf16.mxu1 %v2554_v37 }
  0x19   : > { %2289 = vmatmul.mubr.msk.bf16.vlgmr.msra.gmra.mxu0 %vm776_vm1, %v2467_v5  ;;  %v2493_v31 = vld [vmem:[%s2666_s18 + $0xd8] sm:$0xff]   ;;  %v2494_v32 = vld [vmem:[%s2666_s18 + $0xe0] sm:$0xff]   ;;  %v2495_v33 = vld [vmem:[%s2666_s18 + $0xe8] sm:$0xff]  }
  0x1a   : > { %2292 = vmatprep.mubr.msk.bf16.mxu0 %vm776_vm1, %v2468_v6  ;;  %v2496_v34 = vld [vmem:[%s2666_s18 + $0xf0] sm:$0xff]   ;;  %v2497_v35 = vld [vmem:[%s2666_s18 + $0xf8] sm:$0xff]   ;;  %s530_s18 = scalar_lea.vmem %s2968_s16, %s2082_s27 }
  0x1b   : > { %2359 = vmatpush3.bf16.msra.mxu1 %v2501_v46 }
  0x1c   : > { %2360 = vmatprep.subr.bf16.mxu1 %v2554_v37 }
  0x1f   : > { %2361 = vmatpush3.bf16.msra.mxu1 %v2502_v53 }
  0x20   : > { %2362 = vmatprep.subr.bf16.mxu1 %v2554_v37 }
  0x21   : > { %2293 = vmatmul.mubr.msk.bf16.gmra.mxu0 %vm776_vm1, %v2469_v7  ;;  %v2505_v7 = vld [vmem:[%s2954_s2] sm:$0xff]  }
  0x22   : > { %2296 = vmatprep.mubr.msk.bf16.mxu0 %vm776_vm1, %v2470_v8 }
  0x23   : > { %2363 = vmatpush3.bf16.msra.mxu1 %v2503_v57 }
  0x24   : > { %2364 = vmatprep.subr.bf16.mxu1 %v2554_v37 }
  0x27   : > { %2365 = vmatpush3.bf16.msra.mxu1 %v2504_v0 }
  0x28   : > { %2366 = vmatprep.subr.bf16.mxu1 %v2554_v37 }
  0x29   : > { %2297 = vmatmul.mubr.msk.bf16.gmra.mxu0 %vm776_vm1, %v2471_v9 }
  0x2a   : > { %2300 = vmatprep.mubr.msk.bf16.mxu0 %vm776_vm1, %v2472_v10 }
  0x2b   : > { %2367 = vmatpush3.bf16.msra.mxu1 %v2505_v7 }
  0x2c   : > { %2372 = vmatprep.subr.bf16.mxu1 %v2554_v37 }
  0x31   : > { %2301 = vmatmul.mubr.msk.bf16.gmra.mxu0 %vm776_vm1, %v2473_v11 }
  0x32   : > { %2304 = vmatprep.mubr.msk.bf16.mxu0 %vm776_vm1, %v2474_v12 }
  0x39   : > { %2305 = vmatmul.mubr.msk.bf16.gmra.mxu0 %vm776_vm1, %v2475_v13 }
  0x3a   : > { %2308 = vmatprep.mubr.msk.bf16.mxu0 %vm776_vm1, %v2476_v14 }
  0x41   : > { %2309 = vmatmul.mubr.msk.bf16.gmra.mxu0 %vm776_vm1, %v2477_v15 }
  0x42   : > { %2312 = vmatprep.mubr.msk.bf16.mxu0 %vm776_vm1, %v2478_v16 }
  0x49   : > { %2313 = vmatmul.mubr.msk.bf16.gmra.mxu0 %vm776_vm1, %v2479_v17 }
  0x4a   : > { %2316 = vmatprep.mubr.msk.bf16.mxu0 %vm776_vm1, %v2480_v18 }
  0x51   : > { %2317 = vmatmul.mubr.msk.bf16.gmra.mxu0 %vm776_vm1, %v2481_v19 }
  0x52   : > { %2320 = vmatprep.mubr.msk.bf16.mxu0 %vm776_vm1, %v2482_v20 }
  0x59   : > { %2321 = vmatmul.mubr.msk.bf16.gmra.mxu0 %vm776_vm1, %v2483_v21 }
  0x5a   : > { %2324 = vmatprep.mubr.msk.bf16.mxu0 %vm776_vm1, %v2484_v22 }
  0x61   : > { %2325 = vmatmul.mubr.msk.bf16.gmra.mxu0 %vm776_vm1, %v2485_v23 }
  0x62   : > { %2328 = vmatprep.mubr.msk.bf16.mxu0 %vm776_vm1, %v2486_v24 }
  0x69   : > { %2329 = vmatmul.mubr.msk.bf16.gmra.mxu0 %vm776_vm1, %v2487_v25 }
  0x6a   : > { %2332 = vmatprep.mubr.msk.bf16.mxu0 %vm776_vm1, %v2488_v26 }
  0x71   : > { %2333 = vmatmul.mubr.msk.bf16.gmra.mxu0 %vm776_vm1, %v2489_v27 }
  0x72   : > { %2336 = vmatprep.mubr.msk.bf16.mxu0 %vm776_vm1, %v2490_v28 }
  0x79   : > { %2337 = vmatmul.mubr.msk.bf16.gmra.mxu0 %vm776_vm1, %v2491_v29 }
  0x7a   : > { %2340 = vmatprep.mubr.msk.bf16.mxu0 %vm776_vm1, %v2492_v30 }
  0x81   : > { %2341 = vmatmul.mubr.msk.bf16.gmra.mxu0 %vm776_vm1, %v2493_v31 }
  0x82   : > { %2344 = vmatprep.mubr.msk.bf16.mxu0 %vm776_vm1, %v2494_v32 }
  0x89   : > { %2345 = vmatmul.mubr.msk.bf16.gmra.mxu0 %vm776_vm1, %v2495_v33 }
  0x8a   : > { %2348 = vmatprep.mubr.msk.bf16.mxu0 %vm776_vm1, %v2496_v34 }
  0x91   : > { %2349 = vmatmul.mubr.msk.bf16.gmra.mxu0 %vm776_vm1, %v2497_v35 }
  0x92   : > { %2448 = vmatprep.mubr.msk.bf16.mxu0 %vm2555_vm2, %v2554_v37 }
  0xd9   : > { %v2290_v39 = vpop.f32.mrf.mxu0 }
  0xda   : > { %v1168_v48 = vmax.f32 %v2290_v39, 0.0 }
  0xdb   : > { %v911_v40 = vpop.f32.mrf.mxu0 }
  0xdc   : > { %v1166_v44 = vmax.f32 %v911_v40, 0.0 }
  0xdd   : > { %v2291_v42 = vpop.f32.mrf.mxu0 }
  0xde   : > { %v1169_v51 = vmax.f32 %v2291_v42, 0.0 }
  0xdf   : > { %v914_v43 = vpop.f32.mrf.mxu0 }
  0xe0   : > { %v1167_v45 = vmax.f32 %v914_v43, 0.0 }
  0xe1   : > { %v2294_v47 = vpop.f32.mrf.mxu0 }
  0xe2   : > { %v1230_v49 = vadd.f32 %v1167_v45, %v1166_v44  ;;  %v1172_v62 = vmax.f32 %v2294_v47, 0.0 }
  0xe3   : > { %v927_v50 = vpop.f32.mrf.mxu0 }
  0xe4   : > { %v1231_v52 = vadd.f32 %v1230_v49, %v1168_v48  ;;  %v1170_v55 = vmax.f32 %v927_v50, 0.0 }
  0xe5   : > { %v2295_v54 = vpop.f32.mrf.mxu0 }
  0xe6   : > { %v1232_v56 = vadd.f32 %v1231_v52, %v1169_v51  ;;  %v1173_v2 = vmax.f32 %v2295_v54, 0.0 }
  0xe7   : > { %v930_v58 = vpop.f32.mrf.mxu0 }
  0xe8   : > { %v1233_v59 = vadd.f32 %v1232_v56, %v1170_v55  ;;  %v1171_v60 = vmax.f32 %v930_v58, 0.0 }
  0xe9   : > { %v2298_v61 = vpop.f32.mrf.mxu0 }
  0xea   : > { %v1234_v63 = vadd.f32 %v1233_v59, %v1171_v60  ;;  %v1176_v12 = vmax.f32 %v2298_v61, 0.0 }
  0xeb   : > { %v943_v1 = vpop.f32.mrf.mxu0 }
  0xec   : > { %v1235_v3 = vadd.f32 %v1234_v63, %v1172_v62  ;;  %v1174_v5 = vmax.f32 %v943_v1, 0.0 }
  0xed   : > { %v2299_v4 = vpop.f32.mrf.mxu0 }
  0xee   : > { %v1236_v6 = vadd.f32 %v1235_v3, %v1173_v2  ;;  %v1177_v15 = vmax.f32 %v2299_v4, 0.0 }
  0xef   : > { %v946_v8 = vpop.f32.mrf.mxu0 }
  0xf0   : > { %v1237_v9 = vadd.f32 %v1236_v6, %v1174_v5  ;;  %v1175_v10 = vmax.f32 %v946_v8, 0.0 }
  0xf1   : > { %v2302_v11 = vpop.f32.mrf.mxu0 }
  0xf2   : > { %v1238_v13 = vadd.f32 %v1237_v9, %v1175_v10  ;;  %v1180_v24 = vmax.f32 %v2302_v11, 0.0 }
  0xf3   : > { %v959_v14 = vpop.f32.mrf.mxu0 }
  0xf4   : > { %v1239_v16 = vadd.f32 %v1238_v13, %v1176_v12  ;;  %v1178_v18 = vmax.f32 %v959_v14, 0.0 }
  0xf5   : > { %v2303_v17 = vpop.f32.mrf.mxu0 }
  0xf6   : > { %v1240_v19 = vadd.f32 %v1239_v16, %v1177_v15  ;;  %v1181_v27 = vmax.f32 %v2303_v17, 0.0 }
  0xf7   : > { %v962_v20 = vpop.f32.mrf.mxu0 }
  0xf8   : > { %v1241_v21 = vadd.f32 %v1240_v19, %v1178_v18  ;;  %v1179_v22 = vmax.f32 %v962_v20, 0.0 }
  0xf9   : > { %v2306_v23 = vpop.f32.mrf.mxu0 }
  0xfa   : > { %v1242_v25 = vadd.f32 %v1241_v21, %v1179_v22  ;;  %v1184_v36 = vmax.f32 %v2306_v23, 0.0 }
  0xfb   : > { %v975_v26 = vpop.f32.mrf.mxu0 }
  0xfc   : > { %v1243_v28 = vadd.f32 %v1242_v25, %v1180_v24  ;;  %v1182_v30 = vmax.f32 %v975_v26, 0.0 }
  0xfd   : > { %v2307_v29 = vpop.f32.mrf.mxu0 }
  0xfe   : > { %v1244_v31 = vadd.f32 %v1243_v28, %v1181_v27  ;;  %v1185_v40 = vmax.f32 %v2307_v29, 0.0 }
  0xff   : > { %v978_v32 = vpop.f32.mrf.mxu0 }
 0x100   : > { %v1245_v33 = vadd.f32 %v1244_v31, %v1182_v30  ;;  %v1183_v34 = vmax.f32 %v978_v32, 0.0 }
 0x101   : > { %v2310_v35 = vpop.f32.mrf.mxu0 }
 0x102   : > { %v1246_v38 = vadd.f32 %v1245_v33, %v1183_v34  ;;  %v1188_v49 = vmax.f32 %v2310_v35, 0.0 }
 0x103   : > { %v991_v39 = vpop.f32.mrf.mxu0 }
 0x104   : > { %v1247_v41 = vadd.f32 %v1246_v38, %v1184_v36  ;;  %v1186_v43 = vmax.f32 %v991_v39, 0.0 }
 0x105   : > { %v2311_v42 = vpop.f32.mrf.mxu0 }
 0x106   : > { %v1248_v44 = vadd.f32 %v1247_v41, %v1185_v40  ;;  %v1189_v52 = vmax.f32 %v2311_v42, 0.0 }
 0x107   : > { %v994_v45 = vpop.f32.mrf.mxu0 }
 0x108   : > { %v1249_v46 = vadd.f32 %v1248_v44, %v1186_v43  ;;  %v1187_v47 = vmax.f32 %v994_v45, 0.0 }
 0x109   : > { %v2314_v48 = vpop.f32.mrf.mxu0 }
 0x10a   : > { %v1250_v50 = vadd.f32 %v1249_v46, %v1187_v47  ;;  %v1192_v61 = vmax.f32 %v2314_v48, 0.0 }
 0x10b   : > { %v1007_v51 = vpop.f32.mrf.mxu0 }
 0x10c   : > { %v1251_v53 = vadd.f32 %v1250_v50, %v1188_v49  ;;  %v1190_v55 = vmax.f32 %v1007_v51, 0.0 }
 0x10d   : > { %v2315_v54 = vpop.f32.mrf.mxu0 }
 0x10e   : > { %v1252_v56 = vadd.f32 %v1251_v53, %v1189_v52  ;;  %v1193_v0 = vmax.f32 %v2315_v54, 0.0 }
 0x10f   : > { %v1010_v57 = vpop.f32.mrf.mxu0 }
 0x110   : > { %v1253_v58 = vadd.f32 %v1252_v56, %v1190_v55  ;;  %v1191_v59 = vmax.f32 %v1010_v57, 0.0 }
 0x111   : > { %v2318_v60 = vpop.f32.mrf.mxu0 }
 0x112   : > { %v1254_v62 = vadd.f32 %v1253_v58, %v1191_v59  ;;  %v1196_v9 = vmax.f32 %v2318_v60, 0.0 }
 0x113   : > { %v1023_v63 = vpop.f32.mrf.mxu0 }
 0x114   : > { %v1255_v1 = vadd.f32 %v1254_v62, %v1192_v61  ;;  %v1194_v3 = vmax.f32 %v1023_v63, 0.0 }
 0x115   : > { %v2319_v2 = vpop.f32.mrf.mxu0 }
 0x116   : > { %v1256_v4 = vadd.f32 %v1255_v1, %v1193_v0  ;;  %v1197_v12 = vmax.f32 %v2319_v2, 0.0 }
 0x117   : > { %v1026_v5 = vpop.f32.mrf.mxu0 }
 0x118   : > { %v1257_v6 = vadd.f32 %v1256_v4, %v1194_v3  ;;  %v1195_v7 = vmax.f32 %v1026_v5, 0.0 }
 0x119   : > { %v2322_v8 = vpop.f32.mrf.mxu0 }
 0x11a   : > { %v1258_v10 = vadd.f32 %v1257_v6, %v1195_v7  ;;  %v1200_v20 = vmax.f32 %v2322_v8, 0.0 }
 0x11b   : > { %v1039_v11 = vpop.f32.mrf.mxu0 }
 0x11c   : > { %v1259_v13 = vadd.f32 %v1258_v10, %v1196_v9  ;;  %v1198_v17 = vmax.f32 %v1039_v11, 0.0 }
 0x11d   : > { %v2323_v14 = vpop.f32.mrf.mxu0 }
 0x11e   : > { %v2770_v15 = vadd.f32 %v1259_v13, %v1197_v12  ;;  %v1201_v23 = vmax.f32 %v2323_v14, 0.0 }
 0x11f   : > { %v1042_v16 = vpop.f32.mrf.mxu0 }
 0x120   : > { %v1199_v18 = vmax.f32 %v1042_v16, 0.0 }
 0x121   : > { %v2326_v19 = vpop.f32.mrf.mxu0 }
 0x122   : > { %v1267_v21 = vadd.f32 %v1199_v18, %v1198_v17  ;;  %v1204_v32 = vmax.f32 %v2326_v19, 0.0 }
 0x123   : > { %v1055_v22 = vpop.f32.mrf.mxu0 }
 0x124   : > { %v1268_v24 = vadd.f32 %v1267_v21, %v1200_v20  ;;  %v1202_v26 = vmax.f32 %v1055_v22, 0.0 }
 0x125   : > { %v2327_v25 = vpop.f32.mrf.mxu0 }
 0x126   : > { %v1269_v27 = vadd.f32 %v1268_v24, %v1201_v23  ;;  %v1205_v35 = vmax.f32 %v2327_v25, 0.0 }
 0x127   : > { %v1058_v28 = vpop.f32.mrf.mxu0 }
 0x128   : > { %v1270_v29 = vadd.f32 %v1269_v27, %v1202_v26  ;;  %v1203_v30 = vmax.f32 %v1058_v28, 0.0  ;;  %v1261_v27 = vrot.slane %v2770_v15, 4 }
 0x129   : > { %v2330_v31 = vpop.f32.mrf.mxu0 }
 0x12a   : > { %v1271_v33 = vadd.f32 %v1270_v29, %v1203_v30  ;;  %v1208_v45 = vmax.f32 %v2330_v31, 0.0 }
 0x12b   : > { %v1071_v34 = vpop.f32.mrf.mxu0 }
 0x12c   : > { %v1272_v36 = vadd.f32 %v1271_v33, %v1204_v32  ;;  %v1206_v39 = vmax.f32 %v1071_v34, 0.0  ;;  %v1262_v34 = vadd.f32 %v1261_v27, %v2770_v15 }
 0x12d   : > { %v2331_v38 = vpop.f32.mrf.mxu0 }
 0x12e   : > { %v1273_v40 = vadd.f32 %v1272_v36, %v1205_v35  ;;  %v1209_v48 = vmax.f32 %v2331_v38, 0.0 }
 0x12f   : > { %v1074_v41 = vpop.f32.mrf.mxu0 }
 0x130   : > { %v1274_v42 = vadd.f32 %v1273_v40, %v1206_v39  ;;  %v1207_v43 = vmax.f32 %v1074_v41, 0.0 }
 0x131   : > { %v2334_v44 = vpop.f32.mrf.mxu0 }
 0x132   : > { %v1275_v46 = vadd.f32 %v1274_v42, %v1207_v43  ;;  %v1212_v57 = vmax.f32 %v2334_v44, 0.0  ;;  %v1263_v42 = vrot.slane %v1262_v34, 2 }
 0x133   : > { %v1087_v47 = vpop.f32.mrf.mxu0 }
 0x134   : > { %v1276_v49 = vadd.f32 %v1275_v46, %v1208_v45  ;;  %v1210_v51 = vmax.f32 %v1087_v47, 0.0  ;;  %v1264_v47 = vadd.f32 %v1263_v42, %v1262_v34 }
 0x135   : > { %v2335_v50 = vpop.f32.mrf.mxu0 }
 0x136   : > { %v1277_v52 = vadd.f32 %v1276_v49, %v1209_v48  ;;  %v1213_v60 = vmax.f32 %v2335_v50, 0.0 }
 0x137   : > { %v1090_v53 = vpop.f32.mrf.mxu0 }
 0x138   : > { %v1278_v54 = vadd.f32 %v1277_v52, %v1210_v51  ;;  %v1211_v55 = vmax.f32 %v1090_v53, 0.0  ;;  %v1265_v52 = vrot.slane %v1264_v47, 1 }
 0x139   : > { %v2338_v56 = vpop.f32.mrf.mxu0 }
 0x13a   : > { %v1279_v58 = vadd.f32 %v1278_v54, %v1211_v55  ;;  %v1216_v5 = vmax.f32 %v2338_v56, 0.0  ;;  %v1266_v15 = vadd.f32 %v1265_v52, %v1264_v47  ;;  %v2518_v47 = vld [vmem:[%s2960_s8 + $0x18] sm:$0xff]  }
 0x13b   : > { %v1103_v59 = vpop.f32.mrf.mxu0 }
 0x13c   : > { %v1280_v61 = vadd.f32 %v1279_v58, %v1212_v57  ;;  %v1214_v63 = vmax.f32 %v1103_v59, 0.0  ;;  %v1304_v57 = vmul.f32 0.00390625, %v1266_v15 }
 0x13d   : > { %v2339_v62 = vpop.f32.mrf.mxu0 }
 0x13e   : > { %v1281_v0 = vadd.f32 %v1280_v61, %v1213_v60  ;;  %v1217_v8 = vmax.f32 %v2339_v62, 0.0  ;;  %v1306_v60 = vpack.c.bf16 %v1304_v57, %v1304_v57 }
 0x13f   : > { %v1106_v1 = vpop.f32.mrf.mxu0 }
 0x140   : > { %v1282_v2 = vadd.f32 %v1281_v0, %v1214_v63  ;;  %v1215_v3 = vmax.f32 %v1106_v1, 0.0  ;;  %v1326_v62 = vunpack.c.l.b16 %v1306_v60 }
 0x141   : > { %v2342_v4 = vpop.f32.mrf.mxu0 }
 0x142   : > { %v1283_v6 = vadd.f32 %v1282_v2, %v1215_v3  ;;  %v1220_v18 = vmax.f32 %v2342_v4, 0.0  ;;  %v2506_v2 = vld [vmem:[%s2957_s5 + $0x38] sm:$0xff]   ;;  %v2507_v3 = vld [vmem:[%s2957_s5 + $0x30] sm:$0xff]   ;;  %v2508_v4 = vld [vmem:[%s2957_s5 + $0x28] sm:$0xff]  }
 0x143   : > { %v1119_v7 = vpop.f32.mrf.mxu0 }
 0x144   : > { %v1284_v9 = vadd.f32 %v1283_v6, %v1216_v5  ;;  %v1218_v11 = vmax.f32 %v1119_v7, 0.0  ;;  %v2509_v5 = vld [vmem:[%s2957_s5 + $0x20] sm:$0xff]   ;;  %v2510_v6 = vld [vmem:[%s2957_s5 + $0x18] sm:$0xff]   ;;  %v2511_v7 = vld [vmem:[%s2957_s5 + $0x10] sm:$0xff]  }
 0x145   : > { %v2343_v10 = vpop.f32.mrf.mxu0 }
 0x146   : > { %v1285_v12 = vadd.f32 %v1284_v9, %v1217_v8  ;;  %v1221_v21 = vmax.f32 %v2343_v10, 0.0  ;;  %v2512_v8 = vld [vmem:[%s2957_s5 + $0x8] sm:$0xff]   ;;  %v2513_v9 = vld [vmem:[%s2957_s5] sm:$0xff]  }
 0x147   : > { %v1122_v13 = vpop.f32.mrf.mxu0 }
 0x148   : > { %v1286_v14 = vadd.f32 %v1285_v12, %v1218_v11  ;;  %v1219_v16 = vmax.f32 %v1122_v13, 0.0 }
 0x149   : > { %v2346_v17 = vpop.f32.mrf.mxu0 }
 0x14a   : > { %v1287_v19 = vadd.f32 %v1286_v14, %v1219_v16  ;;  %v1224_v31 = vmax.f32 %v2346_v17, 0.0 }
 0x14b   : > { %v1135_v20 = vpop.f32.mrf.mxu0 }
 0x14c   : > { %v1288_v22 = vadd.f32 %v1287_v19, %v1220_v18  ;;  %v1222_v24 = vmax.f32 %v1135_v20, 0.0 }
 0x14d   : > { %v2347_v23 = vpop.f32.mrf.mxu0 }
 0x14e   : > { %v1289_v25 = vadd.f32 %v1288_v22, %v1221_v21  ;;  %v1225_v35 = vmax.f32 %v2347_v23, 0.0 }
 0x14f   : > { %v1138_v26 = vpop.f32.mrf.mxu0 }
 0x150   : > { %v1290_v28 = vadd.f32 %v1289_v25, %v1222_v24  ;;  %v1223_v29 = vmax.f32 %v1138_v26, 0.0 }
 0x151   : > { %v2350_v30 = vpop.f32.mrf.mxu0 }
 0x152   : > { %v1291_v32 = vadd.f32 %v1290_v28, %v1223_v29  ;;  %v1228_v45 = vmax.f32 %v2350_v30, 0.0 }
 0x153   : > { %v1151_v33 = vpop.f32.mrf.mxu0 }
 0x154   : > { %v1292_v36 = vadd.f32 %v1291_v32, %v1224_v31  ;;  %v1226_v39 = vmax.f32 %v1151_v33, 0.0 }
 0x155   : > { %v2351_v38 = vpop.f32.mrf.mxu0 }
 0x156   : > { %v1293_v40 = vadd.f32 %v1292_v36, %v1225_v35  ;;  %v1229_v48 = vmax.f32 %v2351_v38, 0.0  ;;  %v2159_v35 = vld [vmem:[%s2955_s3] ss:$0 sm:$0xff] }
 0x157   : > { %v1154_v41 = vpop.f32.mrf.mxu0  ;;  %v2160_v38 = vld [vmem:[%s2956_s4] ss:$0 sm:$0xff] }
 0x158   : > { %v1294_v43 = vadd.f32 %v1293_v40, %v1226_v39  ;;  %v1227_v44 = vmax.f32 %v1154_v41, 0.0 }
 0x15a   : > { %v1295_v46 = vadd.f32 %v1294_v43, %v1227_v44  ;;  %v2514_v43 = vld [vmem:[%s2960_s8 + $0x38] sm:$0xff]   ;;  %v2515_v44 = vld [vmem:[%s2960_s8 + $0x30] sm:$0xff]  }
 0x15c   : > { %v1296_v49 = vadd.f32 %v1295_v46, %v1228_v45  ;;  %v2516_v45 = vld [vmem:[%s2960_s8 + $0x28] sm:$0xff]   ;;  %v2517_v46 = vld [vmem:[%s2960_s8 + $0x20] sm:$0xff]  }
 0x15e   : > { %v1297_v50 = vadd.f32 %v1296_v49, %v1229_v48  ;;  %v2519_v48 = vld [vmem:[%s2960_s8 + $0x10] sm:$0xff]   ;;  %v2520_v49 = vld [vmem:[%s2960_s8 + $0x8] sm:$0xff]  }
 0x160   : > { %v1298_v51 = vrot.slane %v1297_v50, 4 }
 0x162   : > { %v1299_v53 = vadd.f32 %v1298_v51, %v1297_v50  ;;  %v2521_v50 = vld [vmem:[%s2960_s8] sm:$0xff]  }
 0x164   : > { %v1300_v54 = vrot.slane %v1299_v53, 2 }
 0x166   : > { %v1301_v55 = vadd.f32 %v1300_v54, %v1299_v53 }
 0x168   : > { %v1302_v56 = vrot.slane %v1301_v55, 1 }
 0x16a   : > { %v1303_v58 = vadd.f32 %v1302_v56, %v1301_v55 }
 0x16c   : > { %v1305_v59 = vmul.f32 0.00390625, %v1303_v58 }
 0x16e   : > { %v1307_v61 = vpack.c.bf16 %v1305_v59, %v1305_v59 }
 0x170   : > { %v1327_v63 = vunpack.c.l.b16 %v1307_v61 }
 0x172   : > { %v1329_v0 = vsel %vm1328_vm3, %v1327_v63, %v1326_v62 }
 0x173   : > { %v1330_v1 = vpack.c.b16 %v1329_v0, %v1329_v0 }
 0x175   : > { %2369 = vmatmul.mubr.bf16.vlgmr.msra.gmra.mxu1 %v1330_v1 }
 0x176   : > { %2388 = vmatprep.mubr.msk.bf16.mxu1 %vm2555_vm2, %v2554_v37  ;;  %2373 = vmatpush3.bf16.msra.mxu1 %v2506_v2 }
 0x177   : > { %2374 = vmatprep.subr.bf16.mxu1 %v2554_v37 }
 0x17a   : > { %2375 = vmatpush3.bf16.msra.mxu1 %v2507_v3 }
 0x17b   : > { %2376 = vmatprep.subr.bf16.mxu1 %v2554_v37 }
 0x17e   : > { %2377 = vmatpush3.bf16.msra.mxu1 %v2508_v4 }
 0x17f   : > { %2378 = vmatprep.subr.bf16.mxu1 %v2554_v37 }
 0x182   : > { %2379 = vmatpush3.bf16.msra.mxu1 %v2509_v5 }
 0x183   : > { %2380 = vmatprep.subr.bf16.mxu1 %v2554_v37 }
 0x186   : > { %2381 = vmatpush3.bf16.msra.mxu1 %v2510_v6 }
 0x187   : > { %2382 = vmatprep.subr.bf16.mxu1 %v2554_v37 }
 0x18a   : > { %2383 = vmatpush3.bf16.msra.mxu1 %v2511_v7 }
 0x18b   : > { %2384 = vmatprep.subr.bf16.mxu1 %v2554_v37 }
 0x18e   : > { %2385 = vmatpush3.bf16.msra.mxu1 %v2512_v8 }
 0x18f   : > { %2386 = vmatprep.subr.bf16.mxu1 %v2554_v37 }
 0x192   : > { %2387 = vmatpush3.bf16.msra.mxu1 %v2513_v9 }
 0x193   : > { %2392 = vmatprep.subr.bf16.mxu1 %v2554_v37 }
 0x235   : > { %v1414_v10 = vpop.f32.mrf.mxu1 }
 0x236   : > { %v1420_v11 = vsel %vm873_vm0, %v1414_v10, 0.0 }
 0x237   : > { %v1421_v12 = vrot.slane %v1420_v11, 4  ;;  %v2370_v13 = vpop.f32.mrf.mxu1 }
 0x239   : > { %v1422_v14 = vadd.f32 %v1421_v12, %v1420_v11  ;;  %v1417_v16 = vpop.f32.mrf.mxu1  ;;  %v2170_v12 = vld [vmem:[%s2959_s7] ss:$0 sm:$0xff] }
 0x23b   : > { %v1423_v17 = vrot.slane %v1422_v14, 2  ;;  %v2371_v18 = vpop.f32.mrf.mxu1 }
 0x23c   : > { %v2522_v18 = vld [vmem:[%s2962_s10 + $0x38] sm:$0xff]  }
 0x23d   : > { %v1424_v19 = vadd.f32 %v1423_v17, %v1422_v14 }
 0x23f   : > { %v1425_v20 = vrot.slane %v1424_v19, 1 }
 0x241   : > { %v1426_v21 = vadd.f32 %v1425_v20, %v1424_v19  ;;  %v2523_v19 = vld [vmem:[%s2962_s10 + $0x30] sm:$0xff]   ;;  %v2524_v20 = vld [vmem:[%s2962_s10 + $0x28] sm:$0xff]  }
 0x243   : > { %v1427_v22 = vmul.f32 0.5, %v1426_v21  ;;  %v2525_v21 = vld [vmem:[%s2962_s10 + $0x20] sm:$0xff]  }
 0x245   : > { %v1428_v23 = vsub.f32 %v1414_v10, %v1427_v22  ;;  %v2169_v10 = vld [vmem:[%s2958_s6] ss:$0 sm:$0xff]  ;;  %v2526_v22 = vld [vmem:[%s2962_s10 + $0x18] sm:$0xff]  }
 0x247   : > { %v1429_v24 = vmul.f32 %v1428_v23, %v1428_v23 }
 0x249   : > { %v1430_v25 = vsel %vm873_vm0, %v1429_v24, 0.0  ;;  %v2528_v24 = vld [vmem:[%s2962_s10 + $0x8] sm:$0xff]  }
 0x24a   : > { %v1431_v26 = vrot.slane %v1430_v25, 4 }
 0x24c   : > { %v1432_v27 = vadd.f32 %v1431_v26, %v1430_v25  ;;  %v2529_v25 = vld [vmem:[%s2962_s10] sm:$0xff]   ;;  %v2530_v26 = vld [vmem:[%s2965_s13 + $0x38] sm:$0xff]  }
 0x24d   : > { %2433 = vmatpush3.bf16.msra.mxu0 %v2530_v26 }
 0x24e   : > { %v1433_v28 = vrot.slane %v1432_v27, 2  ;;  %2434 = vmatprep.subr.bf16.mxu0 %v2554_v37 }
 0x250   : > { %v1434_v29 = vadd.f32 %v1433_v28, %v1432_v27  ;;  %v2531_v27 = vld [vmem:[%s2965_s13 + $0x30] sm:$0xff]   ;;  %v2532_v28 = vld [vmem:[%s2965_s13 + $0x28] sm:$0xff]  }
 0x251   : > { %2435 = vmatpush3.bf16.msra.mxu0 %v2531_v27 }
 0x252   : > { %v1435_v30 = vrot.slane %v1434_v29, 1  ;;  %2436 = vmatprep.subr.bf16.mxu0 %v2554_v37 }
 0x254   : > { %v1436_v31 = vadd.f32 %v1435_v30, %v1434_v29  ;;  %v2533_v29 = vld [vmem:[%s2965_s13 + $0x20] sm:$0xff]   ;;  %v2534_v30 = vld [vmem:[%s2965_s13 + $0x18] sm:$0xff]  }
 0x255   : > { %2437 = vmatpush3.bf16.msra.mxu0 %v2532_v28 }
 0x256   : > { %v1437_v32 = vmul.f32 0.5, %v1436_v31  ;;  %2438 = vmatprep.subr.bf16.mxu0 %v2554_v37  ;;  %v2171_v31 = vld [vmem:[%s2961_s9] ss:$0 sm:$0xff] }
 0x258   : > { %v1438_v33 = vadd.f32 1e-05, %v1437_v32 }
 0x259   : > { %2439 = vmatpush3.bf16.msra.mxu0 %v2533_v29  ;;  %v2190_v29 = vld [vmem:[%s2966_s14] ss:$0 sm:$0xff] }
 0x25a   : > { %2538 = vrsqrt.f32 %v1438_v33  ;;  %2440 = vmatprep.subr.bf16.mxu0 %v2554_v37 }
 0x25d   : > { %2441 = vmatpush3.bf16.msra.mxu0 %v2534_v30 }
 0x25e   : > { %2442 = vmatprep.subr.bf16.mxu0 %v2554_v37 }
 0x267   : > { %v2539_v34 = vpop.eup %2538 }
 0x268   : > { %v1440_v36 = vmul.f32 %v2539_v34, %v1428_v23  ;;  %v2527_v23 = vld [vmem:[%s2962_s10 + $0x10] sm:$0xff]  }
 0x26a   : > { %v1448_v39 = vmul.f32 %v2159_v35, %v1440_v36 }
 0x26c   : > { %v1456_v40 = vadd.f32 %v2160_v38, %v1448_v39 }
 0x26e   : > { %v1457_v41 = vmax.f32 %v1456_v40, 0.0 }
 0x270   : > { %v1458_v42 = vpack.c.bf16 %v1457_v41, %v1457_v41 }
 0x272   : > { %2389 = vmatmul.mubr.bf16.vlgmr.msra.gmra.mxu1 %v1458_v42 }
 0x273   : > { %2408 = vmatprep.mubr.msk.bf16.mxu1 %vm2555_vm2, %v2554_v37  ;;  %2393 = vmatpush3.bf16.msra.mxu1 %v2514_v43 }
 0x274   : > { %2394 = vmatprep.subr.bf16.mxu1 %v2554_v37 }
 0x277   : > { %2395 = vmatpush3.bf16.msra.mxu1 %v2515_v44 }
 0x278   : > { %2396 = vmatprep.subr.bf16.mxu1 %v2554_v37 }
 0x27b   : > { %2397 = vmatpush3.bf16.msra.mxu1 %v2516_v45 }
 0x27c   : > { %2398 = vmatprep.subr.bf16.mxu1 %v2554_v37 }
 0x27f   : > { %2399 = vmatpush3.bf16.msra.mxu1 %v2517_v46 }
 0x280   : > { %2400 = vmatprep.subr.bf16.mxu1 %v2554_v37 }
 0x283   : > { %2401 = vmatpush3.bf16.msra.mxu1 %v2518_v47 }
 0x284   : > { %2402 = vmatprep.subr.bf16.mxu1 %v2554_v37 }
 0x287   : > { %2403 = vmatpush3.bf16.msra.mxu1 %v2519_v48 }
 0x288   : > { %2404 = vmatprep.subr.bf16.mxu1 %v2554_v37 }
 0x28b   : > { %2405 = vmatpush3.bf16.msra.mxu1 %v2520_v49 }
 0x28c   : > { %2406 = vmatprep.subr.bf16.mxu1 %v2554_v37 }
 0x28f   : > { %2407 = vmatpush3.bf16.msra.mxu1 %v2521_v50 }
 0x290   : > { %2412 = vmatprep.subr.bf16.mxu1 %v2554_v37 }
 0x332   : > { %v1557_v51 = vpop.f32.mrf.mxu1 }
 0x333   : > { %v1563_v52 = vsel %vm873_vm0, %v1557_v51, 0.0 }
 0x334   : > { %v1564_v53 = vrot.slane %v1563_v52, 4  ;;  %v2390_v54 = vpop.f32.mrf.mxu1 }
 0x336   : > { %v1565_v15 = vadd.f32 %v1564_v53, %v1563_v52  ;;  %v1560_v55 = vpop.f32.mrf.mxu1 }
 0x338   : > { %v1566_v56 = vrot.slane %v1565_v15, 2  ;;  %v2391_v57 = vpop.f32.mrf.mxu1 }
 0x33a   : > { %v1567_v58 = vadd.f32 %v1566_v56, %v1565_v15 }
 0x33c   : > { %v1568_v59 = vrot.slane %v1567_v58, 1 }
 0x33e   : > { %v1569_v60 = vadd.f32 %v1568_v59, %v1567_v58  ;;  %v2535_v59 = vld [vmem:[%s2965_s13 + $0x10] sm:$0xff]  }
 0x33f   : > { %2443 = vmatpush3.bf16.msra.mxu0 %v2535_v59 }
 0x340   : > { %v1570_v61 = vmul.f32 0.5, %v1569_v60  ;;  %2444 = vmatprep.subr.bf16.mxu0 %v2554_v37  ;;  %v2536_v60 = vld [vmem:[%s2965_s13 + $0x8] sm:$0xff]  }
 0x342   : > { %v1571_v62 = vsub.f32 %v1557_v51, %v1570_v61  ;;  %v2537_v61 = vld [vmem:[%s2965_s13] sm:$0xff]  }
 0x343   : > { %2445 = vmatpush3.bf16.msra.mxu0 %v2536_v60 }
 0x344   : > { %v1572_v63 = vmul.f32 %v1571_v62, %v1571_v62  ;;  %2446 = vmatprep.subr.bf16.mxu0 %v2554_v37 }
 0x346   : > { %v1573_v0 = vsel %vm873_vm0, %v1572_v63, 0.0 }
 0x347   : > { %v1574_v1 = vrot.slane %v1573_v0, 4  ;;  %2447 = vmatpush3.bf16.msra.mxu0 %v2537_v61 }
 0x349   : > { %v1575_v2 = vadd.f32 %v1574_v1, %v1573_v0 }
 0x34b   : > { %v1576_v3 = vrot.slane %v1575_v2, 2 }
 0x34d   : > { %v1577_v4 = vadd.f32 %v1576_v3, %v1575_v2 }
 0x34f   : > { %v1578_v5 = vrot.slane %v1577_v4, 1 }
 0x351   : > { %v1579_v6 = vadd.f32 %v1578_v5, %v1577_v4 }
 0x353   : > { %v1580_v7 = vmul.f32 0.5, %v1579_v6 }
 0x355   : > { %v1581_v8 = vadd.f32 1e-05, %v1580_v7 }
 0x357   : > { %2540 = vrsqrt.f32 %v1581_v8 }
 0x364   : > { %v2541_v9 = vpop.eup %2540 }
 0x365   : > { %v1583_v11 = vmul.f32 %v2541_v9, %v1571_v62 }
 0x367   : > { %v1591_v13 = vmul.f32 %v2169_v10, %v1583_v11 }
 0x369   : > { %v1599_v14 = vadd.f32 %v2170_v12, %v1591_v13 }
 0x36b   : > { %v1600_v16 = vmax.f32 %v1599_v14, 0.0 }
 0x36d   : > { %v1601_v17 = vpack.c.bf16 %v1600_v16, %v1600_v16 }
 0x36f   : > { %2409 = vmatmul.mubr.bf16.vlgmr.msra.gmra.mxu1 %v1601_v17 }
 0x370   : > { %2428 = vmatprep.mubr.msk.bf16.mxu1 %vm2555_vm2, %v2554_v37  ;;  %2413 = vmatpush3.bf16.msra.mxu1 %v2522_v18 }
 0x371   : > { %2414 = vmatprep.subr.bf16.mxu1 %v2554_v37 }
 0x374   : > { %2415 = vmatpush3.bf16.msra.mxu1 %v2523_v19 }
 0x375   : > { %2416 = vmatprep.subr.bf16.mxu1 %v2554_v37 }
 0x378   : > { %2417 = vmatpush3.bf16.msra.mxu1 %v2524_v20 }
 0x379   : > { %2418 = vmatprep.subr.bf16.mxu1 %v2554_v37 }
 0x37c   : > { %2419 = vmatpush3.bf16.msra.mxu1 %v2525_v21 }
 0x37d   : > { %2420 = vmatprep.subr.bf16.mxu1 %v2554_v37 }
 0x380   : > { %2421 = vmatpush3.bf16.msra.mxu1 %v2526_v22  ;;  %v2188_v22 = vld [vmem:[%s2963_s11] ss:$0 sm:$0xff] }
 0x381   : > { %2422 = vmatprep.subr.bf16.mxu1 %v2554_v37 }
 0x384   : > { %2423 = vmatpush3.bf16.msra.mxu1 %v2527_v23 }
 0x385   : > { %2424 = vmatprep.subr.bf16.mxu1 %v2554_v37 }
 0x388   : > { %2425 = vmatpush3.bf16.msra.mxu1 %v2528_v24  ;;  %v2189_v24 = vld [vmem:[%s2964_s12] ss:$0 sm:$0xff] }
 0x389   : > { %2426 = vmatprep.subr.bf16.mxu1 %v2554_v37 }
 0x38c   : > { %2427 = vmatpush3.bf16.msra.mxu1 %v2529_v25 }
 0x42f   : > { %v1707_v32 = vpop.f32.mrf.mxu1 }
 0x430   : > { %v1708_v33 = vadd.f32 %v2171_v31, %v1707_v32 }
 0x431   : > { %v2410_v34 = vpop.f32.mrf.mxu1 }
 0x432   : > { %v1713_v35 = vsel %vm873_vm0, %v1708_v33, 0.0 }
 0x433   : > { %v1714_v36 = vrot.slane %v1713_v35, 4  ;;  %v1710_v38 = vpop.f32.mrf.mxu1 }
 0x435   : > { %v1715_v39 = vadd.f32 %v1714_v36, %v1713_v35  ;;  %v2411_v40 = vpop.f32.mrf.mxu1 }
 0x437   : > { %v1716_v41 = vrot.slane %v1715_v39, 2 }
 0x439   : > { %v1717_v42 = vadd.f32 %v1716_v41, %v1715_v39 }
 0x43b   : > { %v1718_v43 = vrot.slane %v1717_v42, 1 }
 0x43d   : > { %v1719_v44 = vadd.f32 %v1718_v43, %v1717_v42 }
 0x43f   : > { %v1720_v45 = vmul.f32 0.5, %v1719_v44 }
 0x441   : > { %v1721_v46 = vsub.f32 %v1708_v33, %v1720_v45 }
 0x443   : > { %v1722_v47 = vmul.f32 %v1721_v46, %v1721_v46 }
 0x445   : > { %v1723_v48 = vsel %vm873_vm0, %v1722_v47, 0.0 }
 0x446   : > { %v1724_v49 = vrot.slane %v1723_v48, 4 }
 0x448   : > { %v1725_v50 = vadd.f32 %v1724_v49, %v1723_v48 }
 0x44a   : > { %v1726_v51 = vrot.slane %v1725_v50, 2 }
 0x44c   : > { %v1727_v52 = vadd.f32 %v1726_v51, %v1725_v50 }
 0x44e   : > { %v1728_v53 = vrot.slane %v1727_v52, 1 }
 0x450   : > { %v1729_v54 = vadd.f32 %v1728_v53, %v1727_v52 }
 0x452   : > { %v1730_v15 = vmul.f32 0.5, %v1729_v54 }
 0x454   : > { %v1731_v55 = vadd.f32 1e-05, %v1730_v15 }
 0x456   : > { %2542 = vrsqrt.f32 %v1731_v55 }
 0x463   : > { %v2543_v56 = vpop.eup %2542 }
 0x464   : > { %v1733_v57 = vmul.f32 %v2543_v56, %v1721_v46 }
 0x466   : > { %v1734_v58 = vpack.c.bf16 %v1733_v57, %v1733_v57  ;;  %1989 = vst [vmem:[%s526_s30] sm:$0x3] %v1733_v57 }
 0x468   : > { %2429 = vmatmul.mubr.bf16.vlgmr.msra.gmra.mxu1 %v1734_v58 }
 0x528   : > { %v1833_v62 = vpop.f32.mrf.mxu1 }
 0x529   : > { %v1839_v63 = vsel %vm873_vm0, %v1833_v62, 0.0 }
 0x52a   : > { %v1840_v0 = vrot.slane %v1839_v63, 4  ;;  %v2430_v1 = vpop.f32.mrf.mxu1 }
 0x52c   : > { %v1841_v2 = vadd.f32 %v1840_v0, %v1839_v63  ;;  %v1836_v3 = vpop.f32.mrf.mxu1 }
 0x52e   : > { %v1842_v4 = vrot.slane %v1841_v2, 2  ;;  %v2431_v5 = vpop.f32.mrf.mxu1 }
 0x530   : > { %v1843_v6 = vadd.f32 %v1842_v4, %v1841_v2 }
 0x532   : > { %v1844_v7 = vrot.slane %v1843_v6, 1 }
 0x534   : > { %v1845_v8 = vadd.f32 %v1844_v7, %v1843_v6 }
 0x536   : > { %v1846_v9 = vmul.f32 0.5, %v1845_v8 }
 0x538   : > { %v1847_v10 = vsub.f32 %v1833_v62, %v1846_v9 }
 0x53a   : > { %v1848_v37 = vmul.f32 %v1847_v10, %v1847_v10 }
 0x53c   : > { %v1849_v11 = vsel %vm873_vm0, %v1848_v37, 0.0 }
 0x53d   : > { %v1850_v12 = vrot.slane %v1849_v11, 4 }
 0x53f   : > { %v1851_v13 = vadd.f32 %v1850_v12, %v1849_v11 }
 0x541   : > { %v1852_v14 = vrot.slane %v1851_v13, 2 }
 0x543   : > { %v1853_v16 = vadd.f32 %v1852_v14, %v1851_v13 }
 0x545   : > { %v1854_v17 = vrot.slane %v1853_v16, 1 }
 0x547   : > { %v1855_v18 = vadd.f32 %v1854_v17, %v1853_v16 }
 0x549   : > { %v1856_v19 = vmul.f32 0.5, %v1855_v18 }
 0x54b   : > { %v1857_v20 = vadd.f32 1e-05, %v1856_v19 }
 0x54d   : > { %2544 = vrsqrt.f32 %v1857_v20 }
 0x55a   : > { %v2545_v21 = vpop.eup %2544 }
 0x55b   : > { %v1859_v23 = vmul.f32 %v2545_v21, %v1847_v10 }
 0x55d   : > { %v1867_v25 = vmul.f32 %v2188_v22, %v1859_v23 }
 0x55f   : > { %v1875_v26 = vadd.f32 %v2189_v24, %v1867_v25 }
 0x561   : > { %v1876_v27 = vmax.f32 %v1875_v26, 0.0 }
 0x563   : > { %v1877_v28 = vpack.c.bf16 %v1876_v27, %v1876_v27 }
 0x565   : > { %2449 = vmatmul.mubr.bf16.vlgmr.msra.gmra.mxu0 %v1877_v28 }
 0x625   : > { %v1983_v30 = vpop.f32.mrf.mxu0 }
 0x626   : > { %v1984_v31 = vadd.f32 %v2190_v29, %v1983_v30 }
 0x627   : > { %v2450_v32 = vpop.f32.mrf.mxu0 }
 0x628   : > { %1990 = vst [vmem:[%s530_s18] sm:$0x3] %v1984_v31 }
 0x629   : > { %v1986_v33 = vpop.f32.mrf.mxu0 }
 0x62b   : > { %v2451_v34 = vpop.f32.mrf.mxu0 }
 0x62c PF: > { %s27_s21 = sadd.s32 1, %s2552_s21  }
 0x62d   : > { %p24_p4 = scmp.ge.s32.totalorder %s27_s21, 4  }
 0x62f   :  { %26 = sbr.rel (!%p24_p4) target bundleno = 2 (0x2), region = 122 }

</bundles_post_ra>
